<compile_context>
chip_gen: v5e
topology: v5e:2x2
jax: 0.10.0
libtpu: 0.0.40
codegen_flags: <defaults>
</compile_context>

<pallas_src>
import functools
import math

import jax
import jax.numpy as jnp
from jax.experimental import pallas as pl
from jax.experimental.pallas import tpu as pltpu


_TARGET_BLOCK_BYTES = 4 * 1024 * 1024   # ~4 MiB activation blocks (>=85% of HBM roofline)
_VMEM_LIMIT_CAP = 48 * 1024 * 1024      # leave headroom inside v7x's 64 MiB physical VMEM


def pe_add_bcast_kernel(x_ref, pe_ref, o_ref):
    # x_ref/o_ref: (ts, B, D); pe_ref: (ts, 1, D). Broadcast over the batch (sublane) axis.
    o_ref[...] = x_ref[...] + pe_ref[...]
    # TODO(synk): training-mode nn.Dropout(p=0.1) (mask + 1/(1-p) scale) would need
    # pltpu.prng_seed + pltpu.stateful_bernoulli; eval-mode dropout is the identity.


def pe_add_flat_kernel(x_ref, pe_ref, o_ref, *, batch):
    # x_ref/o_ref: (ts, B*D) lane-dense tiles; pe_ref: (ts, D).
    # pe repeats exactly `batch` times along the lane axis -> cheap in-VMEM replication
    # instead of streaming a full-size pe from HBM or recomputing sin per element.
    pe = pe_ref[...]
    if batch > 1:
        pe = jnp.concatenate([pe] * batch, axis=-1)
    o_ref[...] = x_ref[...] + pe


def _choose_seq_tile(S, row_bytes, itemsize):
    """Sequence-axis tile: dtype-packed sublane multiple sized to ~_TARGET_BLOCK_BYTES."""
    sub = max(8, 32 // itemsize)                 # f32: 8, bf16: 16, int8/fp8: 32
    ts = max(1, _TARGET_BLOCK_BYTES // max(row_bytes, 1))
    ts = (ts // sub) * sub
    if ts < sub:
        ts = sub
    if ts >= S:
        return S                                 # single block == full dim (always legal)
    return ts                                    # multiple of sub; ragged tail is masked


def _sinusoidal_pe(S, D, dtype):
    """pe[s, 0::2] = sin(s * div), pe[s, 1::2] = cos(s * div) — identical to the torch buffer."""
    position = jnp.arange(S, dtype=jnp.float32)[:, None]                         # (S, 1)
    div_term = jnp.exp(jnp.arange(0, D, 2, dtype=jnp.float32)
                       * (-math.log(10000.0) / float(D)))                        # (D/2,)
    ang = position * div_term                                                    # (S, D/2)
    pe = jnp.stack([jnp.sin(ang), jnp.cos(ang)], axis=-1).reshape(S, D)          # interleave
    return pe.astype(dtype)


def _compiler_params(x_block_bytes, pe_block_bytes):
    # 2 pipeline buffers each for x-in, pe-in and out, plus a little internal headroom.
    need = 2 * (2 * x_block_bytes + pe_block_bytes) + (2 << 20)
    vmem_limit = int(min(max(need, 16 << 20), _VMEM_LIMIT_CAP))
    return pltpu.CompilerParams(dimension_semantics=("parallel",),
                                vmem_limit_bytes=vmem_limit)


@jax.jit
def positional_encoding(x):
    """x: (seq_len, batch, d_model) -> same shape with sinusoidal PE added (eval-mode dropout)."""
    S, B, D = x.shape
    itemsize = jnp.dtype(x.dtype).itemsize
    pe = _sinusoidal_pe(S, D, x.dtype)           # (S, D); sin/cos hoisted out of the kernel

    if B >= 8:
        # 3-D broadcast layout: batch fills the sublane axis, D is the lane axis.
        row_bytes = B * D * itemsize
        ts = _choose_seq_tile(S, row_bytes, itemsize)
        grid = (pl.cdiv(S, ts),)
        return pl.pallas_call(
            pe_add_bcast_kernel,
            out_shape=jax.ShapeDtypeStruct((S, B, D), x.dtype),
            grid=grid,
            in_specs=[
                pl.BlockSpec((ts, B, D), lambda i: (i, 0, 0)),   # activation tile
                pl.BlockSpec((ts, 1, D), lambda i: (i, 0, 0)),   # pe tile (+1/B HBM read)
            ],
            out_specs=pl.BlockSpec((ts, B, D), lambda i: (i, 0, 0)),
            compiler_params=_compiler_params(ts * row_bytes, ts * D * itemsize),
        )(x, pe[:, None, :])

    # B < 8: flattened lane-dense layout avoids sublane padding waste.
    F = B * D
    x2d = x.reshape(S, F)                        # free row-major reshape under jit
    row_bytes = F * itemsize
    ts = _choose_seq_tile(S, row_bytes, itemsize)
    grid = (pl.cdiv(S, ts),)
    kernel = functools.partial(pe_add_flat_kernel, batch=B)
    out2d = pl.pallas_call(
        kernel,
        out_shape=jax.ShapeDtypeStruct((S, F), x.dtype),
        grid=grid,
        in_specs=[
            pl.BlockSpec((ts, F), lambda i: (i, 0)),             # activation tile
            pl.BlockSpec((ts, D), lambda i: (i, 0)),             # pe tile (1/B of x traffic)
        ],
        out_specs=pl.BlockSpec((ts, F), lambda i: (i, 0)),
        compiler_params=_compiler_params(ts * row_bytes, ts * D * itemsize),
    )(x2d, pe)
    return out2d.reshape(S, B, D)


def positional_encoding_ref(x):
    """Plain-JAX reference mirroring the PyTorch buffer construction."""
    S, B, D = x.shape
    position = jnp.arange(S, dtype=jnp.float32)[:, None]
    div_term = jnp.exp(jnp.arange(0, D, 2, dtype=jnp.float32) * (-math.log(10000.0) / D))
    pe = jnp.zeros((S, D), jnp.float32)
    pe = pe.at[:, 0::2].set(jnp.sin(position * div_term))
    pe = pe.at[:, 1::2].set(jnp.cos(position * div_term))
    return x + pe[:, None, :]


if __name__ == "__main__":
    key = jax.random.PRNGKey(0)
    # Small (S, N, E) shapes: B<8 flattened path, multi-step seq tiling, and B>=8 3-D path.
    for (S, B, D) in [(8, 2, 32), (64, 4, 128), (64, 8, 128)]:
        key, sub = jax.random.split(key)
        x = jax.random.normal(sub, (S, B, D), dtype=jnp.float32)

        out = jax.block_until_ready(positional_encoding(x))
        ref = positional_encoding_ref(x)

        assert out.shape == x.shape and out.dtype == x.dtype
        assert jnp.allclose(out, ref, atol=2e-5, rtol=2e-5), f"mismatch vs reference for {(S, B, D)}"

    print("KERNEL_OK")
</pallas_src>

<mosaic_0001>
module attributes {stable_mosaic.version = 11 : i64} {
  func.func @pe_add_flat_kernel(%arg0: i32, %arg1: memref<8x64xf32, #tpu.memory_space<vmem>>, %arg2: memref<8x32xf32, #tpu.memory_space<vmem>>, %arg3: memref<8x64xf32, #tpu.memory_space<vmem>>) attributes {dimension_semantics = [#tpu.dimension_semantics<parallel>], iteration_bounds = array<i64: 1>, scalar_prefetch = 0 : i64, scratch_operands = 0 : i64, tpu.core_type = #tpu.core_type<tc>, window_params = [{transform_indices = @transform_0, window_bounds = array<i64: 8, 64>}, {transform_indices = @transform_1, window_bounds = array<i64: 8, 32>}, {transform_indices = @transform_2, window_bounds = array<i64: 8, 64>}]} {
    %c0 = arith.constant 0 : index
    %c0_0 = arith.constant 0 : index
    %0 = vector.load %arg2[%c0, %c0_0] : memref<8x32xf32, #tpu.memory_space<vmem>>, vector<8x32xf32>
    %1 = tpu.concatenate %0, %0 in 1 : vector<8x32xf32>, vector<8x32xf32> -> vector<8x64xf32>
    %c0_1 = arith.constant 0 : index
    %c0_2 = arith.constant 0 : index
    %2 = vector.load %arg1[%c0_1, %c0_2] : memref<8x64xf32, #tpu.memory_space<vmem>>, vector<8x64xf32>
    %3 = arith.addf %2, %1 : vector<8x64xf32>
    %c0_3 = arith.constant 0 : index
    %c0_4 = arith.constant 0 : index
    %4 = vector.load %arg3[%c0_3, %c0_4] : memref<8x64xf32, #tpu.memory_space<vmem>>, vector<8x64xf32>
    tpu.vector_store %arg3[%c0_3, %c0_4], %3 {strides = array<i32>} : memref<8x64xf32, #tpu.memory_space<vmem>>, vector<8x64xf32>,
    return
  }
  func.func @transform_0(%arg0: i32) -> (i32, i32) {
    %c0_i32 = arith.constant 0 : i32
    %c0_i32_0 = arith.constant 0 : i32
    return %arg0, %c0_i32 : i32, i32
  }
  func.func @transform_1(%arg0: i32) -> (i32, i32) {
    %c0_i32 = arith.constant 0 : i32
    %c0_i32_0 = arith.constant 0 : i32
    return %arg0, %c0_i32 : i32, i32
  }
  func.func @transform_2(%arg0: i32) -> (i32, i32) {
    %c0_i32 = arith.constant 0 : i32
    %c0_i32_0 = arith.constant 0 : i32
    return %arg0, %c0_i32 : i32, i32
  }
}

</mosaic_0001>

<bundles_post_ra>
// kernel: positional_encoding.1
= control target key start
LH: loop header
LB: loop body
LE: loop exit
PB: predicated region body
PF: predicated region fallthrough
CT: control target
= control target key end

     0   :  { %s27_s11 = smov 32   ;;  %vm16_vm0 = vcmask 261120   ;;  %vm20_vm1 = vcmask 523264   ;;  %s52_s1 = inlined_call_operand.vmem [shape: f32[8,32], index: 1, kind: input, shape index: {}]   ;;  %s53_s0 = inlined_call_operand.vmem [shape: f32[8,64], index: 0, kind: input, shape index: {}]   ;;  %s54_s2 = inlined_call_operand.vmem [shape: f32[8,64], index: 2, kind: output, shape index: {}]  }
   0x1   :  { %v11_v0 = vld [vmem:[%s52_s1] sm:$0xff] }
   0x2   :  { %13 = vrot.lane.b32.xlu0 %v11_v0, %s27_s11  ;;  %v18_v1 = vld [vmem:[%s53_s0] sm:$0xff] }
  0x74   :  { %v14_v2 = vpop.permute.xlu0 %13 }
  0x75   :  { %v17_v3 = vsel %vm16_vm0, %v11_v0, %v14_v2 }
  0x76   :  { %v19_v4 = vadd.f32 %v18_v1, %v17_v3 }
  0x78   :  { %21 = vst.msk [vmem:[%s54_s2] sm:$0xff] %vm20_vm1, %v19_v4 }

</bundles_post_ra>
